<compile_context>
chip_gen: v5e
topology: v5e:2x2
jax: 0.10.0
libtpu: 0.0.40
codegen_flags: <defaults>
</compile_context>

<pallas_src>
import functools
import math

import jax
import jax.numpy as jnp
from jax.experimental import pallas as pl
from jax.experimental.pallas import tpu as pltpu

_LOG_LO = math.log(1e-8)
_LOG_HI = math.log(1.0 - 1e-8)


def _tile_loss(gamma_int, gamma_f, p_total, logit_ref, tgt_ref, cw_ref):
    """Masked per-pixel focal loss for one (C, tile_p) tile -> (1, tile_p) f32."""
    x = logit_ref[...].astype(jnp.float32)                    # (C, TP)
    c, tp = x.shape

    # log-softmax over the class (sublane) axis.
    m = jnp.max(x, axis=0, keepdims=True)                     # (1, TP)
    log_sum_e = jnp.log(jnp.sum(jnp.exp(x - m), axis=0, keepdims=True))

    # Select target-class logit / class weight with a bool mask (no
    # materialized f32 one-hot, no extra cast / multiplies).
    tgt = tgt_ref[...].astype(jnp.int32)                      # (1, TP)
    cls = jax.lax.broadcasted_iota(jnp.int32, (c, tp), 0)     # (C, TP)
    sel = cls == tgt                                          # (C, TP) bool
    x_t = jnp.sum(jnp.where(sel, x, 0.0), axis=0, keepdims=True)            # (1,TP)
    cw_t = jnp.sum(jnp.where(sel, cw_ref[...], 0.0), axis=0, keepdims=True)  # (1,TP)

    # p = softmax prob at target class; clamp to [1e-8, 1-1e-8] done
    # equivalently in log space (monotone).
    logp = jnp.clip((x_t - m) - log_sum_e, _LOG_LO, _LOG_HI)
    p = jnp.exp(logp)
    one_minus_p = 1.0 - p

    if gamma_int is not None:                                  # integer gamma
        if gamma_int == 0:
            focal = jnp.ones_like(one_minus_p)
        else:
            focal = one_minus_p
            for _ in range(gamma_int - 1):
                focal = focal * one_minus_p
    else:                                                      # non-integer gamma
        focal = one_minus_p ** gamma_f

    loss = -cw_t * focal * logp                                # (1, TP)

    # Mask tail pixels BEFORE any reduction/store so garbage/NaN from a
    # partially out-of-bounds last block never leaks into the sums.
    lane = jax.lax.broadcasted_iota(jnp.int32, (1, tp), 1)
    valid = (pl.program_id(1) * tp + lane) < p_total
    return jnp.where(valid, loss, 0.0)


def _focal_mean_kernel(gamma_int, gamma_f, p_total,
                       logit_ref, tgt_ref, cw_ref, partial_ref):
    loss = _tile_loss(gamma_int, gamma_f, p_total, logit_ref, tgt_ref, cw_ref)
    s = jnp.sum(loss, axis=1, keepdims=True)                   # (1, 1) tile sum
    lane = jax.lax.broadcasted_iota(jnp.int32, (1, 128), 1)
    # Lane 0 carries the tile sum; other lanes zero -> exact wrapper-side sum.
    partial_ref[...] = jnp.where(lane == 0, s, 0.0)


def _focal_pixel_kernel(gamma_int, gamma_f, p_total,
                        logit_ref, tgt_ref, cw_ref, loss_ref):
    loss_ref[...] = _tile_loss(gamma_int, gamma_f, p_total,
                               logit_ref, tgt_ref, cw_ref)


def _vmem_budget():
    """(f32-equivalent logits-block budget, vmem_limit_bytes) per chip gen."""
    try:
        cap = pltpu.get_tpu_info().vmem_capacity_bytes
    except Exception:
        cap = 128 * 1024 * 1024
    if cap <= 64 * 1024 * 1024:               # v7x-class: 64 MiB per TensorCore
        return 4 * 1024 * 1024, 30 * 1024 * 1024
    return 6 * 1024 * 1024, 64 * 1024 * 1024  # v5e / v6e: 128 MiB VMEM


def focal_loss_2d(logit, target, class_weight=None, gamma=2, size_average=True,
                  tile_p=None):
    """Pallas FocalLoss2d forward (type='softmax').

    logit:  (B, C, H, W) float
    target: (B, H, W) integer class index per pixel
    class_weight: length-C per-class weights (None -> all ones)
    """
    B, C, H, W = logit.shape
    P = H * W
    N = B * P

    if class_weight is None:
        class_weight = [1.0] * C

    # Free reshapes only -- no HBM transpose. Pixels go on the lane axis,
    # classes on the sublane axis.
    x = logit.reshape(B, C, P)
    tgt_dtype = jnp.int16 if C <= 32767 else jnp.int32   # narrower HBM stream
    tgt = target.reshape(B, 1, P).astype(tgt_dtype)
    cw = jnp.asarray(class_weight, jnp.float32).reshape(C, 1)

    block_budget, vmem_limit = _vmem_budget()
    if tile_p is None:
        # Budget in f32-equivalent bytes so bf16 inputs don't double tile_p
        # (the f32 working copies in the body don't shrink).
        max_tile = max(128, (block_budget // (C * 4)) // 128 * 128)
        tile_p = int(min(max_tile, pl.cdiv(P, 128) * 128))
    assert tile_p % 128 == 0

    num_pt = pl.cdiv(P, tile_p)
    grid = (B, num_pt)

    g = float(gamma)
    gamma_int = int(g) if (g.is_integer() and 0 <= g <= 8) else None

    in_specs = [
        pl.BlockSpec((None, C, tile_p), lambda b, p: (b, 0, p)),   # logits
        pl.BlockSpec((None, 1, tile_p), lambda b, p: (b, 0, p)),   # targets
        pl.BlockSpec((C, 1), lambda b, p: (0, 0)),                 # class wts
    ]
    compiler_params = pltpu.CompilerParams(
        dimension_semantics=("parallel", "parallel"),
        vmem_limit_bytes=vmem_limit)

    if size_average:
        # Mean path: only per-(b, pixel-tile) partial sums go back to HBM.
        kernel = functools.partial(_focal_mean_kernel, gamma_int, g, P)
        partials = pl.pallas_call(
            kernel,
            out_shape=jax.ShapeDtypeStruct((B * num_pt, 1, 128), jnp.float32),
            grid_spec=pltpu.PrefetchScalarGridSpec(
                num_scalar_prefetch=0,
                grid=grid,
                in_specs=in_specs,
                out_specs=pl.BlockSpec((None, 1, 128),
                                       lambda b, p: (b * num_pt + p, 0, 0)),
            ),
            compiler_params=compiler_params,
        )(x, tgt, cw)
        return jnp.sum(partials) / N

    # Per-pixel path: lane-dense (1, tile_p) stores, no reduction output.
    kernel = functools.partial(_focal_pixel_kernel, gamma_int, g, P)
    loss_px = pl.pallas_call(
        kernel,
        out_shape=jax.ShapeDtypeStruct((B, 1, P), jnp.float32),
        grid_spec=pltpu.PrefetchScalarGridSpec(
            num_scalar_prefetch=0,
            grid=grid,
            in_specs=in_specs,
            out_specs=pl.BlockSpec((None, 1, tile_p), lambda b, p: (b, 0, p)),
        ),
        compiler_params=compiler_params,
    )(x, tgt, cw)
    # Matches the reference batch_loss layout: (B*H*W, 1), (b, h, w)-major.
    return loss_px.reshape(N, 1)


def _reference(logit, target, class_weight, gamma=2.0, size_average=True):
    B, C, H, W = logit.shape
    x = jnp.transpose(logit, (0, 2, 3, 1)).reshape(-1, C)
    tgt = target.reshape(-1).astype(jnp.int32)
    prob = jax.nn.softmax(x, axis=1)
    p = jnp.take_along_axis(prob, tgt[:, None], axis=1)
    p = jnp.clip(p, 1e-8, 1.0 - 1e-8)
    cw = jnp.asarray(class_weight, jnp.float32)[tgt][:, None]
    batch_loss = -cw * (1.0 - p) ** gamma * jnp.log(p)
    return batch_loss.mean() if size_average else batch_loss


if __name__ == "__main__":
    key = jax.random.PRNGKey(0)
    k1, k2, k3, k4 = jax.random.split(key, 4)

    # Case 1: aligned spatial extent.
    B, C, H, W = 2, 4, 16, 16
    logit = jax.random.normal(k1, (B, C, H, W), dtype=jnp.float32)
    target = jax.random.randint(k2, (B, H, W), 0, C, dtype=jnp.int32)
    class_weight = (1.0, 5.0, 2.0, 0.5)   # one weight per class

    mean_loss = focal_loss_2d(logit, target, class_weight, gamma=2,
                              size_average=True)
    mean_loss = jax.block_until_ready(mean_loss)
    ref_mean = _reference(logit, target, class_weight, gamma=2.0,
                          size_average=True)
    assert jnp.allclose(mean_loss, ref_mean, rtol=1e-5, atol=1e-6), (
        mean_loss, ref_mean)

    per_px = focal_loss_2d(logit, target, class_weight, gamma=2,
                           size_average=False)
    per_px = jax.block_until_ready(per_px)
    ref_px = _reference(logit, target, class_weight, gamma=2.0,
                        size_average=False)
    assert per_px.shape == ref_px.shape, (per_px.shape, ref_px.shape)
    assert jnp.allclose(per_px, ref_px, rtol=1e-4, atol=1e-5), (
        float(jnp.max(jnp.abs(per_px - ref_px))))

    # Case 2: non-128-aligned spatial extent + B=1 (exercises tail masking
    # and the all-parallel grid at batch 1).
    B2, C2, H2, W2 = 1, 4, 7, 9
    logit2 = jax.random.normal(k3, (B2, C2, H2, W2), dtype=jnp.float32)
    target2 = jax.random.randint(k4, (B2, H2, W2), 0, C2, dtype=jnp.int32)
    mean2 = jax.block_until_ready(
        focal_loss_2d(logit2, target2, class_weight, gamma=2,
                      size_average=True))
    ref2 = _reference(logit2, target2, class_weight, gamma=2.0,
                      size_average=True)
    assert jnp.allclose(mean2, ref2, rtol=1e-5, atol=1e-6), (mean2, ref2)

    print("KERNEL_OK")
</pallas_src>

<mosaic_0001>
module attributes {stable_mosaic.version = 11 : i64} {
  func.func @_focal_mean_kernel(%arg0: i32, %arg1: i32, %arg2: memref<1x4x256xf32, #tpu.memory_space<vmem>>, %arg3: memref<1x1x256xi16, #tpu.memory_space<vmem>>, %arg4: memref<4x1xf32, #tpu.memory_space<vmem>>, %arg5: memref<1x1x128xf32, #tpu.memory_space<vmem>>) attributes {dimension_semantics = [#tpu.dimension_semantics<parallel>, #tpu.dimension_semantics<parallel>], iteration_bounds = array<i64: 2, 1>, scalar_prefetch = 0 : i64, scratch_operands = 0 : i64, tpu.core_type = #tpu.core_type<tc>, window_params = [{transform_indices = @transform_0, window_bounds = array<i64: 1, 4, 256>}, {transform_indices = @transform_1, window_bounds = array<i64: 1, 1, 256>}, {pipeline_mode = #tpu.pipeline_mode<synchronous>, transform_indices = @transform_2, window_bounds = array<i64: 4, 1>}, {transform_indices = @transform_3, window_bounds = array<i64: 1, 1, 128>}]} {
    %c0 = arith.constant 0 : index
    %c0_0 = arith.constant 0 : index
    %c0_1 = arith.constant 0 : index
    %0 = vector.load %arg2[%c0, %c0_0, %c0_1] : memref<1x4x256xf32, #tpu.memory_space<vmem>>, vector<1x4x256xf32>
    %1 = vector.shape_cast %0 : vector<1x4x256xf32> to vector<4x256xf32>
    %cst = arith.constant dense<0xFF800000> : vector<256xf32>
    %2 = vector.multi_reduction <maximumf>, %1, %cst [0] : vector<4x256xf32> to vector<256xf32>
    %3 = vector.shape_cast %2 : vector<256xf32> to vector<1x256xf32>
    %4 = vector.broadcast %3 : vector<1x256xf32> to vector<4x256xf32>
    %5 = arith.subf %1, %4 : vector<4x256xf32>
    %6 = math.exp %5 : vector<4x256xf32>
    %cst_2 = arith.constant dense<0.000000e+00> : vector<256xf32>
    %7 = vector.multi_reduction <add>, %6, %cst_2 [0] : vector<4x256xf32> to vector<256xf32>
    %8 = vector.shape_cast %7 : vector<256xf32> to vector<1x256xf32>
    %9 = math.log %8 : vector<1x256xf32>
    %c0_3 = arith.constant 0 : index
    %c0_4 = arith.constant 0 : index
    %c0_5 = arith.constant 0 : index
    %10 = vector.load %arg3[%c0_3, %c0_4, %c0_5] : memref<1x1x256xi16, #tpu.memory_space<vmem>>, vector<1x1x256xi16>
    %11 = vector.shape_cast %10 : vector<1x1x256xi16> to vector<1x256xi16>
    %12 = arith.extsi %11 : vector<1x256xi16> to vector<1x256xi32>
    %13 = tpu.iota {dimensions = array<i32: 0>} : vector<4x256xi32>
    %14 = vector.broadcast %12 : vector<1x256xi32> to vector<4x256xi32>
    %15 = arith.cmpi eq, %13, %14 : vector<4x256xi32>
    %cst_6 = arith.constant 0.000000e+00 : f32
    %16 = vector.broadcast %cst_6 : f32 to vector<4x256xf32>
    %17 = arith.select %15, %1, %16 : vector<4x256xi1>, vector<4x256xf32>
    %cst_7 = arith.constant dense<0.000000e+00> : vector<256xf32>
    %18 = vector.multi_reduction <add>, %17, %cst_7 [0] : vector<4x256xf32> to vector<256xf32>
    %19 = vector.shape_cast %18 : vector<256xf32> to vector<1x256xf32>
    %c0_8 = arith.constant 0 : index
    %c0_9 = arith.constant 0 : index
    %20 = vector.load %arg4[%c0_8, %c0_9] : memref<4x1xf32, #tpu.memory_space<vmem>>, vector<4x1xf32>
    %cst_10 = arith.constant 0.000000e+00 : f32
    %21 = vector.shape_cast %20 : vector<4x1xf32> to vector<4x1xf32>
    %22 = vector.broadcast %21 : vector<4x1xf32> to vector<4x256xf32>
    %23 = vector.broadcast %cst_10 : f32 to vector<4x256xf32>
    %24 = arith.select %15, %22, %23 : vector<4x256xi1>, vector<4x256xf32>
    %cst_11 = arith.constant dense<0.000000e+00> : vector<256xf32>
    %25 = vector.multi_reduction <add>, %24, %cst_11 [0] : vector<4x256xf32> to vector<256xf32>
    %26 = vector.shape_cast %25 : vector<256xf32> to vector<1x256xf32>
    %27 = arith.subf %19, %3 : vector<1x256xf32>
    %28 = arith.subf %27, %9 : vector<1x256xf32>
    %cst_12 = arith.constant -18.420681 : f32
    %cst_13 = arith.constant -9.99999993E-9 : f32
    %29 = vector.broadcast %cst_12 : f32 to vector<1x256xf32>
    %30 = arith.maximumf %29, %28 : vector<1x256xf32>
    %31 = vector.broadcast %cst_13 : f32 to vector<1x256xf32>
    %32 = arith.minimumf %31, %30 : vector<1x256xf32>
    %33 = math.exp %32 : vector<1x256xf32>
    %cst_14 = arith.constant 1.000000e+00 : f32
    %34 = vector.broadcast %cst_14 : f32 to vector<1x256xf32>
    %35 = arith.subf %34, %33 : vector<1x256xf32>
    %36 = arith.mulf %35, %35 : vector<1x256xf32>
    %cst_15 = arith.constant 0.000000e+00 : f32
    %37 = vector.broadcast %cst_15 : f32 to vector<1x256xf32>
    %38 = arith.subf %37, %26 : vector<1x256xf32>
    %39 = arith.mulf %38, %36 : vector<1x256xf32>
    %40 = arith.mulf %39, %32 : vector<1x256xf32>
    %41 = tpu.iota {dimensions = array<i32: 1>} : vector<1x256xi32>
    %c256_i32 = arith.constant 256 : i32
    %42 = arith.muli %arg1, %c256_i32 : i32
    %43 = vector.broadcast %42 : i32 to vector<1x256xi32>
    %44 = arith.addi %43, %41 : vector<1x256xi32>
    %c256_i32_16 = arith.constant 256 : i32
    %45 = vector.broadcast %c256_i32_16 : i32 to vector<1x256xi32>
    %46 = arith.cmpi slt, %44, %45 : vector<1x256xi32>
    %cst_17 = arith.constant 0.000000e+00 : f32
    %47 = vector.broadcast %cst_17 : f32 to vector<1x256xf32>
    %48 = arith.select %46, %40, %47 : vector<1x256xi1>, vector<1x256xf32>
    %cst_18 = arith.constant dense<0.000000e+00> : vector<1xf32>
    %49 = vector.multi_reduction <add>, %48, %cst_18 [1] : vector<1x256xf32> to vector<1xf32>
    %50 = vector.shape_cast %49 : vector<1xf32> to vector<1x1xf32>
    %51 = tpu.iota {dimensions = array<i32: 1>} : vector<1x128xi32>
    %c0_i32 = arith.constant 0 : i32
    %52 = vector.broadcast %c0_i32 : i32 to vector<1x128xi32>
    %53 = arith.cmpi eq, %51, %52 : vector<1x128xi32>
    %cst_19 = arith.constant 0.000000e+00 : f32
    %54 = vector.shape_cast %50 : vector<1x1xf32> to vector<1x1xf32>
    %55 = vector.broadcast %54 : vector<1x1xf32> to vector<1x128xf32>
    %56 = vector.broadcast %cst_19 : f32 to vector<1x128xf32>
    %57 = arith.select %53, %55, %56 : vector<1x128xi1>, vector<1x128xf32>
    %c0_20 = arith.constant 0 : index
    %c0_21 = arith.constant 0 : index
    %c0_22 = arith.constant 0 : index
    %58 = vector.load %arg5[%c0_20, %c0_21, %c0_22] : memref<1x1x128xf32, #tpu.memory_space<vmem>>, vector<1x1x128xf32>
    %59 = vector.shape_cast %58 : vector<1x1x128xf32> to vector<1x128xf32>
    %60 = vector.shape_cast %57 : vector<1x128xf32> to vector<1x1x128xf32>
    tpu.vector_store %arg5[%c0_20, %c0_21, %c0_22], %60 {strides = array<i32>} : memref<1x1x128xf32, #tpu.memory_space<vmem>>, vector<1x1x128xf32>,
    return
  }
  func.func @transform_0(%arg0: i32, %arg1: i32) -> (i32, i32, i32) {
    %c0_i32 = arith.constant 0 : i32
    %c0_i32_0 = arith.constant 0 : i32
    return %arg0, %c0_i32, %arg1 : i32, i32, i32
  }
  func.func @transform_1(%arg0: i32, %arg1: i32) -> (i32, i32, i32) {
    %c0_i32 = arith.constant 0 : i32
    %c0_i32_0 = arith.constant 0 : i32
    return %arg0, %c0_i32, %arg1 : i32, i32, i32
  }
  func.func @transform_2(%arg0: i32, %arg1: i32) -> (i32, i32) {
    %c0_i32 = arith.constant 0 : i32
    %c0_i32_0 = arith.constant 0 : i32
    %c0_i32_1 = arith.constant 0 : i32
    return %c0_i32, %c0_i32_0 : i32, i32
  }
  func.func @transform_3(%arg0: i32, %arg1: i32) -> (i32, i32, i32) {
    %c1_i32 = arith.constant 1 : i32
    %0 = arith.muli %arg0, %c1_i32 : i32
    %1 = arith.addi %0, %arg1 : i32
    %c0_i32 = arith.constant 0 : i32
    %c0_i32_0 = arith.constant 0 : i32
    %c0_i32_1 = arith.constant 0 : i32
    return %1, %c0_i32, %c0_i32_0 : i32, i32, i32
  }
}

</mosaic_0001>

<bundles_post_ra>
// kernel: tpu_custom_call.1
= control target key start
LH: loop header
LB: loop body
LE: loop exit
PB: predicated region body
PF: predicated region fallthrough
CT: control target
= control target key end

     0   :  { %8 = vsyncpa [#allocation3], 0  ;;  %s880_s0 = inlined_call_operand.hbm [shape: f32[2,4,256], index: 0, kind: input, shape index: {}]   ;;  %s881_s1 = inlined_call_operand.vmem [shape: s16[2,1,256], index: 1, kind: input, shape index: {}]   ;;  %s882_s2 = inlined_call_operand.vmem [shape: f32[4,1], index: 2, kind: input, shape index: {}]   ;;  %s883_s3 = inlined_call_operand.hbm [shape: f32[2,1,128], index: 3, kind: output, shape index: {}]  }
   0x1   :  { %10 = vsyncpa [#allocation3 + $0x1], 0 }
   0x2   :  { %11 = vsyncpa [#allocation4], 0 }
   0x3   :  { %13 = vsyncpa [#allocation4 + $0x1], 0  ;;  %s716_s12 = smov 0   ;;  %s718_s13 = smov 0  }
   0x4   :  { %s720_s14 = smov 0   ;;  %s722_s15 = smov 0  }
   0x5   :  { %s724_s16 = smov 0   ;;  %s726_s17 = smov 0  }
   0x6 LB: > { %s494_s18 = sadd.s32 4294967295, %s693_s17   ;;  %s495_s19 = sadd.s32 4294967294, %s693_s17   ;;  %s693_s17 = sphi %s726_s17, %s19_s17   ;;  %s689_s16 = sphi %s724_s16, %s896_s16   ;;  %s685_s15 = sphi %s722_s15, %s895_s15   ;;  %s681_s14 = sphi %s720_s14, %s894_s14   ;;  %s677_s13 = sphi %s718_s13, %s893_s13   ;;  %s673_s12 = sphi %s716_s12, %s892_s12  }
   0x7   : > { %s31_s20 = sadd.s32 1, %s689_s16  ;;  %s40_s21 = sadd.s32 1, %s681_s14 }
   0x8   : > { %p33_p0 = scmp.ge.s32.totalorder %s31_s20, 2  ;;  %p47_p1 = scmp.ne.s32.totalorder %s681_s14, %s677_s13 }
   0x9   : > { %p48_p2 = scmp.eq.s32.totalorder %s693_s17, 0  ;;  %p53_p3 = scmp.ne.s32.totalorder %s677_s13, %s673_s12 }
   0xa   : > { %s898_s20 = smov (%p33_p0, %s31_s20), 0  ;;  %p54_p5 = scmp.eq.s32.totalorder %s494_s18, 0 }
   0xb   : > { %p757_p4 = por %p48_p2, %p47_p1  ;;  %s35_s23 = ssub.s32 %s689_s16, %s898_s20 }
   0xc   : > { %p128_p6 = scmp.eq.s32.totalorder %s494_s18, 1  ;;  %p38_p7 = scmp.eq.s32.totalorder %s35_s23, 0 }
   0xd   : > { %p763_p8 = por %p54_p5, %p53_p3  ;;  %p134_p10 = scmp.eq.s32.totalorder %s495_s19, 1 }
   0xe   : > { %p767_p9 = por %p128_p6, %p47_p1  ;;  %p497_p12 = scmp.ge.s32.totalorder %s693_s17, 2 }
   0xf   : > { %s772_s26 = scalar_select %p38_p7, %s681_s14, %s40_s21  }
  0x10   : > { %p774_p11 = por %p134_p10, %p53_p3  ;;  %p519_p13 = scmp.lt.s32.totalorder %s693_s17, 2 }
  0x11   : > { %s157_s28 = sand.u32 1, %s681_s14   ;;  %s506_s30 = sshll.u32 %s689_s16, 3 }
  0x12   : > { %s498_s29 = sshll.u32 %s157_s28, 3  ;;  %s168_s6 = scalar_lea.hbm %s880_s0, %s506_s30 }
  0x13   : > { %s161_s7 = scalar_lea.vmem [#allocation2], %s498_s29  ;;  %s170_s9 = sshll.u32 %s168_s6, 4  ;;  %s171_s9 = int_to_ptr.hbm [resolvable:$true] %s170_s9 }
  0x14   : > { %s172_s8 = sshll.u32 %s161_s7, 4  ;;  %p512_p0 = pnand %p519_p13, %p757_p4  ;;  %s173_s8 = int_to_ptr.vmem [resolvable:$true] %s172_s8 }
  0x15   : > { %p501_p1 = scmp.ge.s32.totalorder %s693_s17, 1  ;;  %p189_p2 = scmp.lt.s32.totalorder %s693_s17, 3 }
  0x16   : > { %s158_s10 = scalar_lea.sflag [#allocation3], %s157_s28 }
  0x17   : > { %514 = dma.hbm_to_vmem [thread:$0]  (!%p512_p0), %s171_s9, 128, %s173_s8, %s158_s10  }
  0x18   : > { %p190_p3 = pnand %p501_p1, %p189_p2 }
  0x19   : > { %s790_s11 = sand.u32 (!%p190_p3), 1, %s677_s13  }
  0x1a   : > { %193 = sbr.rel (%p190_p3) target bundleno = 291 (0x123), region = 32  ;;  %s502_s18 = sshll.u32 (!%p190_p3), %s790_s11, 3 }
  0x1b   : > { %s196_s19 = scalar_lea.sflag (!%p190_p3), [#allocation3], %s790_s11  ;;  %s199_s21 = scalar_lea.vmem (!%p190_p3), [#allocation2], %s502_s18 }
  0x1f   : > { %664 = dma.done.wait (%p763_p8), %s196_s19, 128  }
  0x20   : > { %666 = vsyncadd (%p763_p8), %s196_s19, 4294967168  ;;  %v695_v0 = vmov 0   ;;  %v241_v1 = vld [vmem:[%s199_s21] sm:$0xff]  ;;  %v326_v2 = vld [vmem:[%s882_s2] sm:$0xf]  ;;  %vm248_vm0 = vcmask 1043456   ;;  %v297_v24 = vlaneseq  ;;  %s397_s7 = scalar_lea.hbm %s883_s3, %s685_s15 }
  0x21   : > { %570 = vset.pattern.permute.xlu0 %v695_v0  ;;  %243 = vst [vmem:[#allocation1] ss:$2 sm:$0xff] %v241_v1  ;;  %p232_p4 = scmp.lt.s32.totalorder %s685_s15, 1  ;;  %s229_s8 = scalar_lea.vmem [#allocation5], %s790_s11 }
  0x22   : > { %329 = vperm.xlu0 %570, %v326_v2   ;;  %v298_v31 = vshrl.u32 %v297_v24, 7  ;;  %s399_s9 = sshll.u32 %s229_s8, 4  ;;  %s401_s10 = sshll.u32 %s397_s7, 4  ;;  %s400_s9 = int_to_ptr.vmem [resolvable:$true] %s399_s9  ;;  %s402_s10 = int_to_ptr.hbm [resolvable:$true] %s401_s10 }
  0x23   : > { %s233_s24 = scalar_select %p232_p4, %s685_s15, 1 }
  0x24   : > { %s388_s18 = scalar_lea.sflag [#allocation4], %s790_s11  ;;  %s625_s19 = sshra.s32 %s402_s10, 4  ;;  %s626_s19 = int_to_ptr.hbm [resolvable:$true] %s625_s19 }
  0x25   : > { %s503_s28 = sshll.u32 %s233_s24, 1  ;;  %s627_s21 = scalar_lea.hbm %s626_s19, 1 }
  0x26   : > { %s238_s4 = scalar_lea.vmem %s881_s1, %s503_s28  ;;  %p628_p5 = scmp.ne.s32.totalorder %s626_s19, %s627_s21 }
  0x27   : > { %v295_v27 = vld [vmem:[%s238_s4] sm:$0x3]  ;;  %s631_s15 = scalar_lea.hbm %s883_s3, 2  ;;  %p632_p8 = scmp.lt.s32.totalorder %s626_s19, %s883_s3 }
  0x28   : > { %v244_v3 = vld.sshfl [vmem:[#allocation1] sm:$0xff pattern:$0x75316420]  ;;  %v245_v4 = vld.sshfl [vmem:[#allocation1 + $0x8] sm:$0xff pattern:$0x75316420]  ;;  %v296_v28 = vunpack.c.l.b16 %v295_v27  ;;  %p629_p6 = pnand %p628_p5, %p767_p9  ;;  %p633_p10 = scmp.lt.s32.totalorder %s631_s15, %s627_s21 }
  0x29   : > { %v249_v5 = vsel %vm248_vm0, %v244_v3, -inf  ;;  %v256_v6 = vsel %vm248_vm0, %v245_v4, -inf }
  0x2a   : > { %v250_v7 = vrot.slane %v249_v5, 4  ;;  %v257_v8 = vrot.slane %v256_v6, 4  ;;  %v299_v32 = vperm.slane %v296_v28, 0  ;;  %v300_v33 = vperm.slane %v296_v28, 2  ;;  %p630_p7 = pneg %p629_p6  ;;  %p634_p13 = por %p633_p10, %p632_p8 }
  0x2c   : > { %v251_v9 = vmax.f32 %v249_v5, %v250_v7  ;;  %v258_v10 = vmax.f32 %v256_v6, %v257_v8  ;;  %v301_v35 = vperm.slane %v299_v32, 0  ;;  %v302_v36 = vperm.slane %v300_v33, 0  ;;  %p635_p0 = pnand %p634_p13, %p630_p7 }
  0x2e   : > { %v252_v11 = vrot.slane %v251_v9, 2  ;;  %v259_v12 = vrot.slane %v258_v10, 2  ;;  %vm818_vm1 = vcmp.eq.s32.totalorder %v298_v31, %v301_v35  ;;  %vm822_vm2 = vcmp.eq.s32.totalorder %v298_v31, %v302_v36 }
  0x30   : > { %v253_v13 = vmax.f32 %v251_v9, %v252_v11  ;;  %v260_v14 = vmax.f32 %v258_v10, %v259_v12 }
  0x32   : > { %v254_v15 = vrot.slane %v253_v13, 1  ;;  %v261_v16 = vrot.slane %v260_v14, 1 }
  0x34   : > { %v803_v17 = vmax.f32 %v253_v13, %v254_v15  ;;  %v805_v18 = vmax.f32 %v260_v14, %v261_v16 }
  0x36   : > { %v265_v19 = vrot.slane %v805_v18, 4 }
  0x38   : > { %v266_v20 = vsel %vm248_vm0, %v803_v17, %v265_v19 }
  0x39   : > { %v268_v21 = vsub.f32 %v241_v1, %v266_v20 }
  0x3b   : > { %v269_v22 = vmul.f32 1.442695, %v268_v21 }
  0x3d   : > { %571 = vpow2.f32 %v269_v22 }
  0x43   : > { %v572_v23 = vpop.eup %571 }
  0x44   : > { %272 = vst [vmem:[#allocation1] ss:$2 sm:$0xff] %v572_v23 }
  0x4b   : > { %v273_v25 = vld.sshfl [vmem:[#allocation1] sm:$0xff pattern:$0x75316420]  ;;  %v274_v26 = vld.sshfl [vmem:[#allocation1 + $0x8] sm:$0xff pattern:$0x75316420] }
  0x4c   : > { %305 = vst [vmem:[#allocation1] ss:$2 sm:$0xff] %v241_v1  ;;  %v277_v29 = vsel %vm248_vm0, %v273_v25, 0.0  ;;  %v284_v30 = vsel %vm248_vm0, %v274_v26, 0.0 }
  0x4d   : > { %v278_v34 = vrot.slane %v277_v29, 4  ;;  %v285_v37 = vrot.slane %v284_v30, 4 }
  0x4f   : > { %v279_v44 = vadd.f32 %v278_v34, %v277_v29  ;;  %v286_v45 = vadd.f32 %v285_v37, %v284_v30 }
  0x51   : > { %v280_v48 = vrot.slane %v279_v44, 2  ;;  %v287_v50 = vrot.slane %v286_v45, 2 }
  0x53   : > { %v306_v40 = vld.sshfl [vmem:[#allocation1] sm:$0xff pattern:$0x75316420]  ;;  %v307_v41 = vld.sshfl [vmem:[#allocation1 + $0x8] sm:$0xff pattern:$0x75316420]  ;;  %v281_v52 = vadd.f32 %v280_v48, %v279_v44  ;;  %v288_v54 = vadd.f32 %v287_v50, %v286_v45 }
  0x54   : > { %v310_v42 = vsel %vm818_vm1, %v306_v40, 0.0  ;;  %v311_v43 = vsel %vm822_vm2, %v307_v41, 0.0 }
  0x55   : > { %v312_v46 = vsel %vm248_vm0, %v310_v42, 0.0  ;;  %v319_v47 = vsel %vm248_vm0, %v311_v43, 0.0  ;;  %v282_v56 = vrot.slane %v281_v52, 1  ;;  %v289_v58 = vrot.slane %v288_v54, 1 }
  0x56   : > { %v313_v49 = vrot.slane %v312_v46, 4  ;;  %v320_v51 = vrot.slane %v319_v47, 4 }
  0x57   : > { %v283_v60 = vadd.f32 %v282_v56, %v281_v52  ;;  %v290_v62 = vadd.f32 %v289_v58, %v288_v54 }
  0x58   : > { %v314_v53 = vadd.f32 %v313_v49, %v312_v46  ;;  %v321_v55 = vadd.f32 %v320_v51, %v319_v47  ;;  %v371_v49 = vand.u32 127, %v297_v24 }
  0x59   : > { %573 = vlog2.f32 %v283_v60 }
  0x5a   : > { %v315_v57 = vrot.slane %v314_v53, 2  ;;  %v322_v59 = vrot.slane %v321_v55, 2  ;;  %575 = vlog2.f32 %v290_v62  ;;  %vm384_vm3 = vcmp.eq.s32.totalorder %v371_v49, 0 }
  0x5c   : > { %v316_v61 = vadd.f32 %v315_v57, %v314_v53  ;;  %v323_v63 = vadd.f32 %v322_v59, %v321_v55 }
  0x5e   : > { %v317_v0 = vrot.slane %v316_v61, 1  ;;  %v324_v1 = vrot.slane %v323_v63, 1 }
  0x5f   : > { %v574_v3 = vpop.eup %573 }
  0x60   : > { %v318_v2 = vadd.f32 %v317_v0, %v316_v61  ;;  %v325_v4 = vadd.f32 %v324_v1, %v323_v63  ;;  %v576_v5 = vpop.eup %575  ;;  %v292_v6 = vmul.f32 0.6931472, %v574_v3 }
  0x61   : > { %v294_v8 = vmul.f32 0.6931472, %v576_v5 }
  0x62   : > { %v348_v7 = vsub.f32 %v318_v2, %v803_v17  ;;  %v349_v9 = vsub.f32 %v325_v4, %v805_v18 }
  0x64   : > { %v350_v10 = vsub.f32 %v348_v7, %v292_v6  ;;  %v351_v11 = vsub.f32 %v349_v9, %v294_v8 }
  0x66   : > { %v352_v12 = vmax.f32 %v350_v10, -18.420681  ;;  %v353_v13 = vmax.f32 %v351_v11, -18.420681 }
  0x68   : > { %v354_v14 = vmin.f32 %v352_v12, -1e-08  ;;  %v355_v15 = vmin.f32 %v353_v13, -1e-08 }
  0x6a   : > { %v356_v16 = vmul.f32 1.442695, %v354_v14  ;;  %v358_v19 = vmul.f32 1.442695, %v355_v15 }
  0x6c   : > { %577 = vpow2.f32 %v356_v16 }
  0x6d   : > { %579 = vpow2.f32 %v358_v19 }
  0x72   : > { %v578_v26 = vpop.eup %577 }
  0x73   : > { %v580_v29 = vpop.eup %579  ;;  %v360_v34 = vsub.f32 1.0, %v578_v26 }
  0x74   : > { %v361_v35 = vsub.f32 1.0, %v580_v29 }
  0x75   : > { %v362_v40 = vmul.f32 %v360_v34, %v360_v34 }
  0x76   : > { %v363_v41 = vmul.f32 %v361_v35, %v361_v35 }
  0x94   : > { %v330_v20 = vpop.permute.xlu0 %329 }
  0x95   : > { %v332_v21 = vsel %vm818_vm1, %v330_v20, 0.0  ;;  %v333_v17 = vsel %vm822_vm2, %v330_v20, 0.0 }
  0x96   : > { %v334_v22 = vsel %vm248_vm0, %v332_v21, 0.0  ;;  %v341_v18 = vsel %vm248_vm0, %v333_v17, 0.0 }
  0x97   : > { %v335_v23 = vrot.slane %v334_v22, 4  ;;  %v342_v25 = vrot.slane %v341_v18, 4 }
  0x99   : > { %v336_v27 = vadd.f32 %v335_v23, %v334_v22  ;;  %v343_v28 = vadd.f32 %v342_v25, %v341_v18 }
  0x9b   : > { %v337_v30 = vrot.slane %v336_v27, 2  ;;  %v344_v31 = vrot.slane %v343_v28, 2 }
  0x9d   : > { %v338_v32 = vadd.f32 %v337_v30, %v336_v27  ;;  %v345_v33 = vadd.f32 %v344_v31, %v343_v28 }
  0x9f   : > { %v339_v36 = vrot.slane %v338_v32, 1  ;;  %v346_v37 = vrot.slane %v345_v33, 1 }
  0xa1   : > { %v340_v38 = vadd.f32 %v339_v36, %v338_v32  ;;  %v347_v39 = vadd.f32 %v346_v37, %v345_v33 }
  0xa3   : > { %v364_v42 = vsub.f32 0.0, %v340_v38  ;;  %v365_v43 = vsub.f32 0.0, %v347_v39 }
  0xa5   : > { %v366_v44 = vmul.f32 %v364_v42, %v362_v40  ;;  %v367_v45 = vmul.f32 %v365_v43, %v363_v41 }
  0xa7   : > { %v368_v46 = vmul.f32 %v366_v44, %v354_v14  ;;  %v369_v47 = vmul.f32 %v367_v45, %v355_v15 }
  0xa9   : > { %v381_v48 = vadd.f32 %v369_v47, %v368_v46 }
  0xab   : > { %382 = vadd.xlane.f32.xlu0 %v381_v48 }
 0x11e   : > { %v383_v50 = vpop.xlane.xlu0 %382 }
 0x11f   : > { %v385_v51 = vsel %vm384_vm3, %v383_v50, 0.0 }
 0x120   : > { %386 = vst [vmem:[%s229_s8] sm:$0x1] %v385_v51 }
 0x121   : > { %638 = shalt.err (!%p635_p0)
}
 0x122   : > { %509 = dma.vmem_to_hbm [thread:$0]  (%p767_p9), %s400_s9, 16, %s402_s10, %s388_s18  }
 0x123 PF: > { %s413_s11 = sand.u32 1, %s673_s12   ;;  %p516_p1 = pnand %p497_p12, %p774_p11 }
 0x124   : > { %s414_s29 = scalar_lea.sflag [#allocation4], %s413_s11 }
 0x125   : > { %p517_p2 = pneg %p516_p1 }
 0x127   : > { %668 = dma.done.wait (%p517_p2), %s414_s29, 16  }
 0x128   : > { %670 = vsyncadd (%p517_p2), %s414_s29, 4294967280  ;;  %s19_s17 = sadd.s32 1, %s693_s17   ;;  %s892_s12 = smov %s677_s13 }
 0x129   : > { %p16_p3 = scmp.ge.s32.totalorder %s19_s17, 4   ;;  %s893_s13 = smov %s681_s14 }
 0x12a   : > { %s894_s14 = smov %s772_s26  ;;  %s895_s15 = smov %s689_s16 }
 0x12b   : > { %s896_s16 = smov %s898_s20  ;;  %18 = sbr.rel (!%p16_p3) target bundleno = 6 (0x6), region = 80 }
 0x130   :  { %419 = vsyncpa [#allocation3], 1 }
 0x131   :  { %421 = vsyncpa [#allocation3 + $0x1], 1 }
 0x132   :  { %422 = vsyncpa [#allocation4], 1 }
 0x133   :  { %424 = vsyncpa [#allocation4 + $0x1], 1 }

</bundles_post_ra>
